<compile_context>
chip_gen: v6e
topology: v6e:2x2x1
jax: 0.10.0
libtpu: 0.0.40
codegen_flags: <defaults>
</compile_context>

<pallas_src>
import functools
import math

import jax
import jax.numpy as jnp
from jax.experimental import pallas as pl
from jax.experimental.pallas import tpu as pltpu

NEG_INF = -1e30  # stand-in for float('-inf') in the causal mask (same softmax result)


def _layernorm(x, w, b, eps=1e-5):
    mu = jnp.mean(x, axis=-1, keepdims=True)
    var = jnp.mean((x - mu) ** 2, axis=-1, keepdims=True)
    return (x - mu) * jax.lax.rsqrt(var + eps) * w + b


# ----------------- kernel 1: token embedding (Linear) + positional encoding -----------------
def _embed_kernel(src_ref, we_ref, be_ref, pos_ref, out_ref):
    src = src_ref[...].astype(jnp.bfloat16)                 # (B, S, V)
    B, S, V = src.shape
    D = we_ref.shape[1]
    e = jnp.dot(src.reshape(B * S, V), we_ref[...],
                preferred_element_type=jnp.float32).reshape(B, S, D)
    out_ref[...] = e + be_ref[...] + pos_ref[...][None, :, :]


# ----------------- kernel 2: fused decoder stack (all layers in one call) -----------------
def _stack_kernel(x_ref, mask_ref,
                  wqkv_ref, bqkv_ref, wo_ref, bo_ref,
                  n1w_ref, n1b_ref,
                  w1_ref, b1_ref, w2_ref,
                  n2w_ref, n2b_ref,
                  out_ref, x_sc, *, n_head):
    l = pl.program_id(1)                                    # layer axis ("arbitrary")

    @pl.when(l == 0)
    def _():
        x_sc[...] = x_ref[...].astype(jnp.float32)          # load activation once per batch row

    x = x_sc[...]                                           # (S, D) f32, VMEM-resident carry
    S, D = x.shape
    H = n_head
    Dh = D // H

    # ---- self-attention: fused QKV matmul, head-batched score/value matmuls ----
    xb = x.astype(jnp.bfloat16)
    qkv = jnp.dot(xb, wqkv_ref[...],
                  preferred_element_type=jnp.float32) + bqkv_ref[...]   # (S, 3D)

    def split_heads(y):                                     # (S, D) -> (H, S, Dh), bf16
        return jnp.transpose(y.reshape(S, H, Dh), (1, 0, 2)).astype(jnp.bfloat16)

    qh = split_heads(qkv[:, :D])          # q already scaled by 1/sqrt(Dh) (folded into wqkv)
    kh = split_heads(qkv[:, D:2 * D])
    vh = split_heads(qkv[:, 2 * D:])

    s = jnp.einsum('hqd,hkd->hqk', qh, kh,
                   preferred_element_type=jnp.float32)      # (H, S, S) f32
    s = s + mask_ref[...][None, :, :]
    s = s - jnp.max(s, axis=-1, keepdims=True)
    p = jnp.exp(s)
    p = p * pl.reciprocal(jnp.sum(p, axis=-1, keepdims=True), approx=True)
    ctx = jnp.einsum('hqk,hkd->hqd', p.astype(jnp.bfloat16), vh,
                     preferred_element_type=jnp.float32)    # (H, S, Dh)
    ctx = jnp.transpose(ctx, (1, 0, 2)).reshape(S, D)       # concat heads -> (S, D)
    attn = jnp.dot(ctx.astype(jnp.bfloat16), wo_ref[...],
                   preferred_element_type=jnp.float32) + bo_ref[...]

    x = x + attn                                            # dropout1 = identity (p=0)
    x = _layernorm(x, n1w_ref[...], n1b_ref[...])

    # ---- feed-forward ----
    h1 = jnp.dot(x.astype(jnp.bfloat16), w1_ref[...],
                 preferred_element_type=jnp.float32) + b1_ref[...]
    h1 = jnp.maximum(h1, 0.0)                               # ReLU
    ff = jnp.dot(h1.astype(jnp.bfloat16), w2_ref[...],
                 preferred_element_type=jnp.float32)        # no bias

    x = x + ff                                              # dropout2 = identity (p=0)
    x = _layernorm(x, n2w_ref[...], n2b_ref[...])

    x_sc[...] = x                                           # carry to next layer

    @pl.when(l == pl.num_programs(1) - 1)
    def _():
        out_ref[...] = x.astype(out_ref.dtype)              # single writeback per batch row


# ----------------- kernel 3: final LayerNorm + mean-over-seq + fc -----------------
def _head_kernel(x_ref, lnw_ref, lnb_ref, wfc_ref, bfc_ref, out_ref):
    x = x_ref[...]                                          # (B, S, D) f32
    S = x.shape[1]
    x = _layernorm(x, lnw_ref[...], lnb_ref[...])           # Param.LAYER_NORM assumed True
    xm = jnp.sum(x, axis=1) * (1.0 / S)                     # (B, D); mean folded before matmul
    out_ref[...] = (jnp.dot(xm.astype(jnp.bfloat16), wfc_ref[...],
                            preferred_element_type=jnp.float32) + bfc_ref[...])


# ----------------- pallas_call wrappers -----------------
def _vmem_spec():
    return pl.BlockSpec(memory_space=pltpu.MemorySpace.VMEM)


def embed(src, we, be, pos):
    B, S, _ = src.shape
    D = we.shape[1]
    return pl.pallas_call(
        _embed_kernel,
        out_shape=jax.ShapeDtypeStruct((B, S, D), jnp.float32),
        in_specs=[_vmem_spec()] * 4,
        out_specs=_vmem_spec(),
    )(src, we, be, pos)


def decoder_stack(x, mask, p, n_head):
    B, S, D = x.shape
    L = p['wqkv'].shape[0]
    F = p['w1'].shape[2]
    kernel = functools.partial(_stack_kernel, n_head=n_head)

    def wspec(shape):     # per-layer weight slab: pick layer l, stays double-buffered
        return pl.BlockSpec((None,) + shape, lambda b, l: (l, 0, 0))

    in_specs = [
        pl.BlockSpec((None, S, D), lambda b, l: (b, 0, 0)),   # x  (per batch row)
        pl.BlockSpec((S, S), lambda b, l: (0, 0)),            # causal mask (resident)
        wspec((D, 3 * D)),                                    # wqkv
        wspec((1, 3 * D)),                                    # bqkv
        wspec((D, D)),                                        # wo
        wspec((1, D)),                                        # bo
        wspec((1, D)),                                        # norm1 w
        wspec((1, D)),                                        # norm1 b
        wspec((D, F)),                                        # ffn w1
        wspec((1, F)),                                        # ffn b1
        wspec((F, D)),                                        # ffn w2 (bias=False)
        wspec((1, D)),                                        # norm2 w
        wspec((1, D)),                                        # norm2 b
    ]
    return pl.pallas_call(
        kernel,
        out_shape=jax.ShapeDtypeStruct((B, S, D), jnp.float32),
        grid=(B, L),
        in_specs=in_specs,
        out_specs=pl.BlockSpec((None, S, D), lambda b, l: (b, 0, 0)),
        scratch_shapes=[pltpu.VMEM((S, D), jnp.float32)],
        compiler_params=pltpu.CompilerParams(
            dimension_semantics=("parallel", "arbitrary"),
            vmem_limit_bytes=64 * 1024 * 1024),
    )(x, mask, p['wqkv'], p['bqkv'], p['wo'], p['bo'],
      p['n1w'], p['n1b'], p['w1'], p['b1'], p['w2'], p['n2w'], p['n2b'])


def head(x, lnw, lnb, wfc, bfc):
    B = x.shape[0]
    V = wfc.shape[1]
    return pl.pallas_call(
        _head_kernel,
        out_shape=jax.ShapeDtypeStruct((B, V), jnp.float32),
        in_specs=[_vmem_spec()] * 5,
        out_specs=_vmem_spec(),
    )(x, lnw, lnb, wfc, bfc)


# ----------------- parameter construction (deterministic, synthetic) -----------------
def _sinusoidal_pe(max_seq, d_model):
    position = jnp.arange(max_seq, dtype=jnp.float32)[:, None]
    div_term = jnp.exp(jnp.arange(0, d_model, 2, dtype=jnp.float32)
                       * (-math.log(10000.0) / d_model))
    pe = jnp.zeros((max_seq, d_model), jnp.float32)
    pe = pe.at[:, 0::2].set(jnp.sin(position * div_term))
    pe = pe.at[:, 1::2].set(jnp.cos(position * div_term))
    return pe


def init_params(key, vocab_size, d_model, n_head, dim_ff, n_layers, max_seq):
    std = 0.02
    dh = d_model // n_head
    q_scale = 1.0 / math.sqrt(dh)                 # folded into Q weights (zero-cost)
    keys = jax.random.split(key, 2 + n_layers)
    p = {}
    p['we'] = (std * jax.random.normal(keys[0], (vocab_size, d_model),
                                       jnp.float32)).astype(jnp.bfloat16)
    p['be'] = jnp.zeros((1, d_model), jnp.float32)
    p['pos'] = _sinusoidal_pe(max_seq, d_model)

    wqkv, wo, w1, w2 = [], [], [], []
    for l in range(n_layers):
        lk = jax.random.split(keys[2 + l], 6)
        wq = std * jax.random.normal(lk[0], (d_model, d_model), jnp.float32) * q_scale
        wk = std * jax.random.normal(lk[1], (d_model, d_model), jnp.float32)
        wv = std * jax.random.normal(lk[2], (d_model, d_model), jnp.float32)
        wqkv.append(jnp.concatenate([wq, wk, wv], axis=1))
        wo.append(std * jax.random.normal(lk[3], (d_model, d_model), jnp.float32))
        w1.append(std * jax.random.normal(lk[4], (d_model, dim_ff), jnp.float32))
        w2.append(std * jax.random.normal(lk[5], (dim_ff, d_model), jnp.float32))  # bias=False

    p['wqkv'] = jnp.stack(wqkv).astype(jnp.bfloat16)                   # (L, D, 3D)
    p['bqkv'] = jnp.zeros((n_layers, 1, 3 * d_model), jnp.float32)     # (q part pre-scaled; zeros)
    p['wo'] = jnp.stack(wo).astype(jnp.bfloat16)                       # (L, D, D)
    p['bo'] = jnp.zeros((n_layers, 1, d_model), jnp.float32)
    p['n1w'] = jnp.ones((n_layers, 1, d_model), jnp.float32)
    p['n1b'] = jnp.zeros((n_layers, 1, d_model), jnp.float32)
    p['w1'] = jnp.stack(w1).astype(jnp.bfloat16)                       # (L, D, F)
    p['b1'] = jnp.zeros((n_layers, 1, dim_ff), jnp.float32)
    p['w2'] = jnp.stack(w2).astype(jnp.bfloat16)                       # (L, F, D)
    p['n2w'] = jnp.ones((n_layers, 1, d_model), jnp.float32)
    p['n2b'] = jnp.zeros((n_layers, 1, d_model), jnp.float32)

    p['ln_w'] = jnp.ones((1, d_model), jnp.float32)
    p['ln_b'] = jnp.zeros((1, d_model), jnp.float32)
    p['wfc'] = (std * jax.random.normal(keys[1], (d_model, vocab_size),
                                        jnp.float32)).astype(jnp.bfloat16)
    p['bfc'] = jnp.zeros((1, vocab_size), jnp.float32)
    return p


def causal_mask(seq_len):
    i = jnp.arange(seq_len)[:, None]
    j = jnp.arange(seq_len)[None, :]
    return jnp.where(j <= i, 0.0, NEG_INF).astype(jnp.float32)


def transformer_forward(src, params, n_head):
    """src: (batch, seq, vocab_size) float -> (batch, vocab_size)."""
    S = src.shape[1]
    pos = params['pos'][:S]                         # glue: slice positional table
    x = embed(src, params['we'], params['be'], pos)
    mask = causal_mask(S)
    x = decoder_stack(x, mask, params, n_head)      # all layers in one pallas_call
    return head(x, params['ln_w'], params['ln_b'], params['wfc'], params['bfc'])


if __name__ == "__main__":
    vocab_size, d_model, n_head = 16, 32, 4
    dim_feedforward, n_layers, max_seq_length = 64, 2, 16
    batch, seq = 2, 8

    key = jax.random.PRNGKey(0)
    pkey, dkey = jax.random.split(key)
    params = init_params(pkey, vocab_size, d_model, n_head,
                         dim_feedforward, n_layers, max_seq_length)

    tokens = jax.random.randint(dkey, (batch, seq), 0, vocab_size)
    src = jax.nn.one_hot(tokens, vocab_size, dtype=jnp.float32)   # (B, S, V)

    out = transformer_forward(src, params, n_head)
    out = jax.block_until_ready(out)

    assert out.shape == (batch, vocab_size), out.shape
    assert bool(jnp.all(jnp.isfinite(out)))
    print("KERNEL_OK")
</pallas_src>

<mosaic_0001>
module attributes {stable_mosaic.version = 11 : i64} {
  func.func @_embed_kernel(%arg0: memref<2x8x16xf32, #tpu.memory_space<vmem>>, %arg1: memref<16x32xbf16, #tpu.memory_space<vmem>>, %arg2: memref<1x32xf32, #tpu.memory_space<vmem>>, %arg3: memref<8x32xf32, #tpu.memory_space<vmem>>, %arg4: memref<2x8x32xf32, #tpu.memory_space<vmem>>) attributes {dimension_semantics = [], scalar_prefetch = 0 : i64, scratch_operands = 0 : i64, tpu.core_type = #tpu.core_type<tc>} {
    %c0 = arith.constant 0 : index
    %c0_0 = arith.constant 0 : index
    %c0_1 = arith.constant 0 : index
    %0 = vector.load %arg0[%c0, %c0_0, %c0_1] : memref<2x8x16xf32, #tpu.memory_space<vmem>>, vector<2x8x16xf32>
    %1 = arith.truncf %0 : vector<2x8x16xf32> to vector<2x8x16xbf16>
    %2 = vector.shape_cast %1 : vector<2x8x16xbf16> to vector<16x16xbf16>
    %c0_2 = arith.constant 0 : index
    %c0_3 = arith.constant 0 : index
    %3 = vector.load %arg1[%c0_2, %c0_3] : memref<16x32xbf16, #tpu.memory_space<vmem>>, vector<16x32xbf16>
    %cst = arith.constant dense<0.000000e+00> : vector<16x32xf32>
    %4 = tpu.matmul %2, %3, %cst {dimension_numbers = #tpu.dot_dimension_numbers<[1], [0], [0], [1], [0, 0, 1, 1], [], []>} : vector<16x16xbf16>, vector<16x32xbf16>, vector<16x32xf32> -> vector<16x32xf32>
    %5 = vector.shape_cast %4 : vector<16x32xf32> to vector<2x8x32xf32>
    %c0_4 = arith.constant 0 : index
    %c0_5 = arith.constant 0 : index
    %6 = vector.load %arg2[%c0_4, %c0_5] : memref<1x32xf32, #tpu.memory_space<vmem>>, vector<1x32xf32>
    %7 = vector.shape_cast %6 : vector<1x32xf32> to vector<1x1x32xf32>
    %8 = vector.broadcast %7 : vector<1x1x32xf32> to vector<2x8x32xf32>
    %9 = arith.addf %5, %8 : vector<2x8x32xf32>
    %c0_6 = arith.constant 0 : index
    %c0_7 = arith.constant 0 : index
    %10 = vector.load %arg3[%c0_6, %c0_7] : memref<8x32xf32, #tpu.memory_space<vmem>>, vector<8x32xf32>
    %11 = vector.shape_cast %10 : vector<8x32xf32> to vector<1x8x32xf32>
    %12 = vector.broadcast %11 : vector<1x8x32xf32> to vector<2x8x32xf32>
    %13 = arith.addf %9, %12 : vector<2x8x32xf32>
    %c0_8 = arith.constant 0 : index
    %c0_9 = arith.constant 0 : index
    %c0_10 = arith.constant 0 : index
    %14 = vector.load %arg4[%c0_8, %c0_9, %c0_10] : memref<2x8x32xf32, #tpu.memory_space<vmem>>, vector<2x8x32xf32>
    tpu.vector_store %arg4[%c0_8, %c0_9, %c0_10], %13 {strides = array<i32>} : memref<2x8x32xf32, #tpu.memory_space<vmem>>, vector<2x8x32xf32>,
    return
  }
}

</mosaic_0001>

<bundles_post_ra>
// kernel: tpu_custom_call.1
= control target key start
LH: loop header
LB: loop body
LE: loop exit
PB: predicated region body
PF: predicated region fallthrough
CT: control target
= control target key end

     0   :  { %9 = vsyncpa [#allocation3], 0  ;;  %s319_s0 = inlined_call_operand.hbm [shape: f32[2,8,16], index: 0, kind: input, shape index: {}]   ;;  %s320_s1 = inlined_call_operand.hbm [shape: bf16[16,32], index: 1, kind: input, shape index: {}]   ;;  %s321_s2 = inlined_call_operand.vmem [shape: f32[1,32], index: 2, kind: input, shape index: {}]   ;;  %s322_s3 = inlined_call_operand.hbm [shape: f32[8,32], index: 3, kind: input, shape index: {}]   ;;  %s323_s4 = inlined_call_operand.hbm [shape: f32[2,8,32], index: 4, kind: output, shape index: {}]  }
   0x1   :  { %10 = vsyncpa [#allocation6], 0 }
   0x2   :  { %11 = vsyncpa [#allocation4], 0  ;;  %s263_s15 = smov [#allocation5]  }
   0x3   :  { %s29_s16 = sshll.u32 %s263_s15, 4  ;;  %s30_s16 = int_to_ptr.vmem [resolvable:$true] %s29_s16 }
   0x4   :  { %s185_s17 = scalar_lea.vmem %s30_s16, 128  ;;  %p190_p1 = scmp.lt.s32.totalorder %s30_s16, %s30_s16 }
   0x5   :  { %p186_p0 = scmp.ne.s32.totalorder %s30_s16, %s185_s17  ;;  %p191_p2 = scmp.lt.s32.totalorder %s185_s17, %s185_s17 }
   0x7   :  { %p192_p3 = por %p191_p2, %p190_p1 }
   0x9   :  { %p193_p4 = pnand %p192_p3, %p186_p0 }
   0xb   :  { %196 = shalt.err (!%p193_p4)
}
   0xc   :  { %s264_s18 = smov 64   ;;  %s265_s19 = smov 4  }
   0xd   :  { %35 = dma.hbm_to_vmem [thread:$0]  %s320_s1, 128, %s30_s16, [#allocation6], %s264_s18, %s264_s18, %s265_s19  }
   0xe   :  { %s266_s22 = smov [#allocation2]  }
   0xf   :  { %s17_s23 = sshll.u32 %s266_s22, 4  ;;  %s18_s23 = int_to_ptr.vmem [resolvable:$true] %s17_s23 }
  0x10   :  { %s205_s24 = scalar_lea.vmem %s18_s23, 256  ;;  %p210_p6 = scmp.lt.s32.totalorder %s18_s23, %s18_s23 }
  0x11   :  { %p206_p5 = scmp.ne.s32.totalorder %s18_s23, %s205_s24  ;;  %p211_p7 = scmp.lt.s32.totalorder %s205_s24, %s205_s24 }
  0x13   :  { %p212_p8 = por %p211_p7, %p210_p6 }
  0x15   :  { %p213_p9 = pnand %p212_p8, %p206_p5 }
  0x17   :  { %216 = shalt.err (!%p213_p9)
}
  0x18   :  { %s267_s25 = smov 128   ;;  %s268_s26 = smov 8  }
  0x19   :  { %23 = dma.hbm_to_vmem [thread:$0]  %s319_s0, 256, %s18_s23, [#allocation3], %s267_s25, %s267_s25, %s268_s26  }
  0x1a   :  { %s269_s1 = smov [#allocation7]  }
  0x1b   :  { %s44_s29 = sshll.u32 %s269_s1, 4  ;;  %s45_s29 = int_to_ptr.vmem [resolvable:$true] %s44_s29 }
  0x1c   :  { %s225_s30 = scalar_lea.vmem %s45_s29, 128  ;;  %p230_p11 = scmp.lt.s32.totalorder %s45_s29, %s45_s29 }
  0x1d   :  { %p226_p10 = scmp.ne.s32.totalorder %s45_s29, %s225_s30  ;;  %p231_p12 = scmp.lt.s32.totalorder %s225_s30, %s225_s30 }
  0x1f   :  { %p232_p13 = por %p231_p12, %p230_p11 }
  0x21   :  { %p233_p0 = pnand %p232_p13, %p226_p10 }
  0x23   :  { %236 = shalt.err (!%p233_p0)
}
  0x24   :  { %47 = dma.hbm_to_vmem [thread:$0]  %s322_s3, 128, %s45_s29, [#allocation6]  }
  0x25   :  { %257 = dma.done.wait [#allocation3], 256  }
  0x26   :  { %258 = vsyncadd [#allocation3], 4294967040 }
  0x27   :  { %259 = dma.done.wait [#allocation6], 256  }
  0x28   :  { %260 = vsyncadd [#allocation6], 4294967040  ;;  %v270_v0 = vmov 0.0   ;;  %vm271_vm0 = vmmov 0   ;;  %v176_v1 = vld [vmem:[#allocation5] sm:$0xff]   ;;  %v58_v2 = vld [vmem:[#allocation2] sm:$0xff] }
  0x29   :  { %160 = vmatprep.subr.bf16.mxu0 %v270_v0  ;;  %162 = vmatprep.mubr.msk.bf16.mxu0 %vm271_vm0, %v270_v0  ;;  %v59_v3 = vld [vmem:[#allocation2 + $0x8] sm:$0xff]  ;;  %vm75_vm1 = vcmask 130048   ;;  %v156_v5 = vld [vmem:[%s321_s2] ss:$0 sm:$0xff]  ;;  %v129_v7 = vld [vmem:[#allocation7] sm:$0xff]  ;;  %vm132_vm2 = vcmask 261120  }
  0x2a   :  { %161 = vmatpush3.bf16.msra.mxu0 %v176_v1  ;;  %v157_v4 = vpack.c.bf16 %v59_v3, %v58_v2  ;;  %s272_s3 = smov [#allocation8]  }
  0x2b   :  { %s140_s8 = sshll.u32 %s272_s3, 4  ;;  %s141_s8 = int_to_ptr.vmem [resolvable:$true] %s140_s8 }
  0x2c   :  { %s237_s9 = scalar_lea.vmem %s141_s8, 256  ;;  %p242_p2 = scmp.lt.s32.totalorder %s141_s8, %s141_s8 }
  0x2d   :  { %163 = vmatmul.mubr.msk.bf16.vlgmr.msra.gmra.mxu0 %vm75_vm1, %v157_v4  ;;  %p238_p1 = scmp.ne.s32.totalorder %s141_s8, %s237_s9  ;;  %p243_p3 = scmp.lt.s32.totalorder %s237_s9, %s237_s9 }
  0x2f   :  { %p244_p4 = por %p243_p3, %p242_p2 }
  0x31   :  { %p245_p5 = pnand %p244_p4, %p238_p1 }
  0xed   :  { %v113_v6 = vpop.f32.mrf.mxu0 }
  0xee   :  { %v127_v8 = vadd.f32 %v156_v5, %v113_v6 }
  0xef   :  { %v164_v9 = vpop.f32.mrf.mxu0 }
  0xf0   :  { %v130_v10 = vadd.f32 %v129_v7, %v127_v8 }
  0xf1   :  { %v116_v11 = vpop.f32.mrf.mxu0 }
  0xf2   :  { %v128_v12 = vadd.f32 %v156_v5, %v116_v11  ;;  %133 = vst.msk [vmem:[#allocation8] sm:$0xff] %vm132_vm2, %v130_v10 }
  0xf3   :  { %v165_v13 = vpop.f32.mrf.mxu0 }
  0xf4   :  { %v131_v14 = vadd.f32 %v129_v7, %v128_v12 }
  0xf6   :  { %134 = vst.msk [vmem:[#allocation8 + $0x8] sm:$0xff] %vm132_vm2, %v131_v14 }
  0xf7   :  { %248 = shalt.err (!%p245_p5)
}
  0xf8   :  { %146 = dma.vmem_to_hbm [thread:$0]  %s141_s8, 256, %s323_s4, [#allocation4], %s267_s25, %s267_s25, %s268_s26  }
  0xf9   :  { %261 = dma.done.wait [#allocation4], 256  }
  0xfa   :  { %262 = vsyncadd [#allocation4], 4294967040 }
  0xfb   :  { %150 = vsyncpa [#allocation3], 1 }
  0xfc   :  { %151 = vsyncpa [#allocation6], 1 }
  0xfd   :  { %152 = vsyncpa [#allocation4], 1 }

</bundles_post_ra>
